<compile_context>
chip_gen: v5e
topology: v5e:2x2
jax: 0.10.0
libtpu: 0.0.40
codegen_flags: <defaults>
</compile_context>

<pallas_src>
import functools

import jax
import jax.numpy as jnp
from jax import lax
from jax.experimental import pallas as pl
from jax.experimental.pallas import tpu as pltpu


def _cus_angle_loss_kernel(labels_ref, cos_ref, phi_ref, partial_ref, *,
                           n_valid, tile_n):
    tile = pl.program_id(0)

    cos = cos_ref[...].astype(jnp.float32)            # (TN, C)
    phi = phi_ref[...].astype(jnp.float32)            # (TN, C)
    lab = labels_ref[...]                              # (TN, 1) int32

    # One-hot mask built in-register: onehot[i, j] = (j == labels[i]).
    col = lax.broadcasted_iota(jnp.int32, cos.shape, 1)
    onehot = col == lab                                 # (TN, C) bool

    # Target logit = phi at the label column (logits there equal phi).
    tgt = jnp.sum(jnp.where(onehot, phi, 0.0), axis=-1, keepdims=True)   # (TN, 1)

    # output = cos everywhere except the label column where it's phi.
    logits = jnp.where(onehot, phi, cos)                # (TN, C)

    # Numerically stable per-row logsumexp.
    m = jnp.max(logits, axis=-1, keepdims=True)                          # (TN, 1)
    sumexp = jnp.sum(jnp.exp(logits - m), axis=-1, keepdims=True)        # (TN, 1)
    lse = m + jnp.log(sumexp)                                            # (TN, 1)

    per_example = lse - tgt                                              # (TN, 1)

    # Mask rows that only exist because N was padded to a tile multiple.
    row = tile * tile_n + lax.broadcasted_iota(jnp.int32, per_example.shape, 0)
    per_example = jnp.where(row < n_valid, per_example, 0.0)

    # Partial SUM for this tile; lane-dense (8,128) store, reduced outside.
    partial = jnp.sum(per_example)
    partial_ref[...] = jnp.broadcast_to(partial, partial_ref.shape)


def cus_angle_loss(cos_theta, phi_theta, labels, *, max_tile_n=512):
    """cos_theta, phi_theta: (N, C) float; labels: (N,) int -> scalar f32 loss."""
    n, c = cos_theta.shape
    itemsize = jnp.dtype(cos_theta.dtype).itemsize

    # Row tile: multiple of 8, capped so 2 inputs x 2 buffers x TN*C*itemsize
    # stays ~<= 24 MiB (inside default scoped VMEM on v5e/v6e/v7x).
    budget = 24 * 1024 * 1024
    tn_cap = max(8, (budget // (4 * c * itemsize)) // 8 * 8)
    tn = min(max_tile_n, tn_cap, max(8, -(-n // 8) * 8))
    tn = max(8, (tn // 8) * 8)

    n_pad = -(-n // tn) * tn
    num_tiles = n_pad // tn

    labels_col = labels.reshape(n, 1).astype(jnp.int32)
    if n_pad != n:
        pad = n_pad - n
        cos_theta = jnp.pad(cos_theta, ((0, pad), (0, 0)))
        phi_theta = jnp.pad(phi_theta, ((0, pad), (0, 0)))
        labels_col = jnp.pad(labels_col, ((0, pad), (0, 0)))

    kernel = functools.partial(_cus_angle_loss_kernel, n_valid=n, tile_n=tn)

    cost = pl.CostEstimate(
        flops=6 * n * c,
        transcendentals=n * c + n,
        bytes_accessed=2 * n_pad * c * itemsize + n_pad * 4
        + num_tiles * 8 * 128 * 4,
    )

    partials = pl.pallas_call(
        kernel,
        out_shape=jax.ShapeDtypeStruct((num_tiles, 8, 128), jnp.float32),
        grid_spec=pltpu.PrefetchScalarGridSpec(
            num_scalar_prefetch=0,
            grid=(num_tiles,),
            in_specs=[
                pl.BlockSpec((tn, 1), lambda i: (i, 0)),   # labels
                pl.BlockSpec((tn, c), lambda i: (i, 0)),   # cos_theta
                pl.BlockSpec((tn, c), lambda i: (i, 0)),   # phi_theta
            ],
            out_specs=pl.BlockSpec((1, 8, 128), lambda i: (i, 0, 0)),
        ),
        compiler_params=pltpu.CompilerParams(
            dimension_semantics=("parallel",),
            vmem_limit_bytes=32 * 1024 * 1024,
        ),
        cost_estimate=cost,
    )(labels_col, cos_theta, phi_theta)

    return jnp.sum(partials[:, 0, 0]) / n


def _reference(cos_theta, phi_theta, labels):
    n, c = cos_theta.shape
    onehot = jax.nn.one_hot(labels, c, dtype=jnp.bool_)
    logits = jnp.where(onehot, phi_theta.astype(jnp.float32),
                       cos_theta.astype(jnp.float32))
    lse = jax.nn.logsumexp(logits, axis=-1)
    tgt = logits[jnp.arange(n), labels]
    return jnp.mean(lse - tgt)


if __name__ == "__main__":
    key = jax.random.PRNGKey(0)
    k1, k2, k3 = jax.random.split(key, 3)

    # Small test shape: batch of 8, 16 classes.
    N, C = 8, 16
    cos_theta = jax.random.normal(k1, (N, C), dtype=jnp.float32)
    phi_theta = cos_theta - jax.random.uniform(k2, (N, C), dtype=jnp.float32)
    labels = jax.random.randint(k3, (N,), 0, C, dtype=jnp.int32)

    loss = cus_angle_loss(cos_theta, phi_theta, labels)
    jax.block_until_ready(loss)
    ref = _reference(cos_theta, phi_theta, labels)
    assert jnp.allclose(loss, ref, rtol=1e-5, atol=1e-5), (loss, ref)

    # Second check: N not a multiple of the tile, multiple grid steps
    # (exercises batch tiling, padding, and the in-kernel row mask).
    k4, k5, k6 = jax.random.split(jax.random.PRNGKey(1), 3)
    N2, C2 = 20, 16
    cos2 = jax.random.normal(k4, (N2, C2), dtype=jnp.float32)
    phi2 = cos2 - jax.random.uniform(k5, (N2, C2), dtype=jnp.float32)
    lab2 = jax.random.randint(k6, (N2,), 0, C2, dtype=jnp.int32)

    loss2 = cus_angle_loss(cos2, phi2, lab2, max_tile_n=8)
    jax.block_until_ready(loss2)
    ref2 = _reference(cos2, phi2, lab2)
    assert jnp.allclose(loss2, ref2, rtol=1e-5, atol=1e-5), (loss2, ref2)

    print("KERNEL_OK")
</pallas_src>

<mosaic_0001>
module attributes {stable_mosaic.version = 11 : i64} {
  func.func @_cus_angle_loss_kernel(%arg0: i32, %arg1: memref<8x1xi32, #tpu.memory_space<vmem>>, %arg2: memref<8x16xf32, #tpu.memory_space<vmem>>, %arg3: memref<8x16xf32, #tpu.memory_space<vmem>>, %arg4: memref<1x8x128xf32, #tpu.memory_space<vmem>>) attributes {dimension_semantics = [#tpu.dimension_semantics<parallel>], iteration_bounds = array<i64: 1>, scalar_prefetch = 0 : i64, scratch_operands = 0 : i64, tpu.core_type = #tpu.core_type<tc>, window_params = [{transform_indices = @transform_0, window_bounds = array<i64: 8, 1>}, {transform_indices = @transform_1, window_bounds = array<i64: 8, 16>}, {transform_indices = @transform_2, window_bounds = array<i64: 8, 16>}, {transform_indices = @transform_3, window_bounds = array<i64: 1, 8, 128>}]} {
    %c0 = arith.constant 0 : index
    %c0_0 = arith.constant 0 : index
    %0 = vector.load %arg2[%c0, %c0_0] : memref<8x16xf32, #tpu.memory_space<vmem>>, vector<8x16xf32>
    %c0_1 = arith.constant 0 : index
    %c0_2 = arith.constant 0 : index
    %1 = vector.load %arg3[%c0_1, %c0_2] : memref<8x16xf32, #tpu.memory_space<vmem>>, vector<8x16xf32>
    %c0_3 = arith.constant 0 : index
    %c0_4 = arith.constant 0 : index
    %2 = vector.load %arg1[%c0_3, %c0_4] : memref<8x1xi32, #tpu.memory_space<vmem>>, vector<8x1xi32>
    %3 = tpu.iota {dimensions = array<i32: 1>} : vector<8x16xi32>
    %4 = vector.broadcast %2 : vector<8x1xi32> to vector<8x16xi32>
    %5 = arith.cmpi eq, %3, %4 : vector<8x16xi32>
    %cst = arith.constant 0.000000e+00 : f32
    %6 = vector.broadcast %cst : f32 to vector<8x16xf32>
    %7 = arith.select %5, %1, %6 : vector<8x16xi1>, vector<8x16xf32>
    %cst_5 = arith.constant dense<0.000000e+00> : vector<8xf32>
    %8 = vector.multi_reduction <add>, %7, %cst_5 [1] : vector<8x16xf32> to vector<8xf32>
    %9 = vector.shape_cast %8 : vector<8xf32> to vector<8x1xf32>
    %10 = arith.select %5, %1, %0 : vector<8x16xi1>, vector<8x16xf32>
    %cst_6 = arith.constant dense<0xFF800000> : vector<8xf32>
    %11 = vector.multi_reduction <maximumf>, %10, %cst_6 [1] : vector<8x16xf32> to vector<8xf32>
    %12 = vector.shape_cast %11 : vector<8xf32> to vector<8x1xf32>
    %13 = vector.broadcast %12 : vector<8x1xf32> to vector<8x16xf32>
    %14 = arith.subf %10, %13 : vector<8x16xf32>
    %15 = math.exp %14 : vector<8x16xf32>
    %cst_7 = arith.constant dense<0.000000e+00> : vector<8xf32>
    %16 = vector.multi_reduction <add>, %15, %cst_7 [1] : vector<8x16xf32> to vector<8xf32>
    %17 = vector.shape_cast %16 : vector<8xf32> to vector<8x1xf32>
    %18 = math.log %17 : vector<8x1xf32>
    %19 = arith.addf %12, %18 : vector<8x1xf32>
    %20 = arith.subf %19, %9 : vector<8x1xf32>
    %c8_i32 = arith.constant 8 : i32
    %21 = arith.muli %arg0, %c8_i32 : i32
    %22 = tpu.iota {dimensions = array<i32: 0>} : vector<8x1xi32>
    %23 = vector.broadcast %21 : i32 to vector<8x1xi32>
    %24 = arith.addi %23, %22 : vector<8x1xi32>
    %c8_i32_8 = arith.constant 8 : i32
    %25 = vector.broadcast %c8_i32_8 : i32 to vector<8x1xi32>
    %26 = arith.cmpi slt, %24, %25 : vector<8x1xi32>
    %cst_9 = arith.constant 0.000000e+00 : f32
    %27 = vector.broadcast %cst_9 : f32 to vector<8x1xf32>
    %28 = arith.select %26, %20, %27 : vector<8x1xi1>, vector<8x1xf32>
    %29 = vector.shape_cast %28 : vector<8x1xf32> to vector<1x8x1xf32>
    %cst_10 = arith.constant dense<0.000000e+00> : vector<1xf32>
    %30 = vector.multi_reduction <add>, %29, %cst_10 [1, 2] : vector<1x8x1xf32> to vector<1xf32>
    %31 = vector.shape_cast %30 : vector<1xf32> to vector<1x1x1xf32>
    %32 = vector.extract %31[0, 0, 0] : f32 from vector<1x1x1xf32>
    %33 = vector.broadcast %32 : f32 to vector<1x8x128xf32>
    %c0_11 = arith.constant 0 : index
    %c0_12 = arith.constant 0 : index
    %c0_13 = arith.constant 0 : index
    %34 = vector.load %arg4[%c0_11, %c0_12, %c0_13] : memref<1x8x128xf32, #tpu.memory_space<vmem>>, vector<1x8x128xf32>
    tpu.vector_store %arg4[%c0_11, %c0_12, %c0_13], %33 {strides = array<i32>} : memref<1x8x128xf32, #tpu.memory_space<vmem>>, vector<1x8x128xf32>,
    return
  }
  func.func @transform_0(%arg0: i32) -> (i32, i32) {
    %c0_i32 = arith.constant 0 : i32
    %c0_i32_0 = arith.constant 0 : i32
    return %arg0, %c0_i32 : i32, i32
  }
  func.func @transform_1(%arg0: i32) -> (i32, i32) {
    %c0_i32 = arith.constant 0 : i32
    %c0_i32_0 = arith.constant 0 : i32
    return %arg0, %c0_i32 : i32, i32
  }
  func.func @transform_2(%arg0: i32) -> (i32, i32) {
    %c0_i32 = arith.constant 0 : i32
    %c0_i32_0 = arith.constant 0 : i32
    return %arg0, %c0_i32 : i32, i32
  }
  func.func @transform_3(%arg0: i32) -> (i32, i32, i32) {
    %c0_i32 = arith.constant 0 : i32
    %c0_i32_0 = arith.constant 0 : i32
    %c0_i32_1 = arith.constant 0 : i32
    return %arg0, %c0_i32, %c0_i32_0 : i32, i32, i32
  }
}

</mosaic_0001>

<bundles_post_ra>
// kernel: tpu_custom_call.1
= control target key start
LH: loop header
LB: loop body
LE: loop exit
PB: predicated region body
PF: predicated region fallthrough
CT: control target
= control target key end

     0   :  { %8 = vsyncpa [#allocation3], 0  ;;  %s191_s0 = inlined_call_operand.vmem [shape: s32[8,1], index: 0, kind: input, shape index: {}]   ;;  %s192_s1 = inlined_call_operand.vmem [shape: f32[8,16], index: 1, kind: input, shape index: {}]   ;;  %s193_s2 = inlined_call_operand.hbm [shape: f32[8,16], index: 2, kind: input, shape index: {}]   ;;  %s194_s3 = inlined_call_operand.hbm [shape: f32[1,8,128], index: 3, kind: output, shape index: {}]  }
   0x1   :  { %9 = vsyncpa [#allocation4], 0  ;;  %s19_s14 = sshll.u32 %s193_s2, 4  ;;  %s156_s15 = smov [#allocation2]   ;;  %s20_s14 = int_to_ptr.hbm [resolvable:$true] %s19_s14 }
   0x2   :  { %s21_s16 = sshll.u32 %s156_s15, 4  ;;  %s22_s16 = int_to_ptr.vmem [resolvable:$true] %s21_s16 }
   0x3   :  { %24 = dma.hbm_to_vmem [thread:$0]  %s20_s14, 128, %s22_s16, [#allocation3]  }
   0x4   :  { %152 = dma.done.wait [#allocation3], 128  }
   0x5   :  { %153 = vsyncadd [#allocation3], 4294967168  ;;  %v157_v0 = vmov 0   ;;  %v31_v1 = vld [vmem:[%s191_s0] sm:$0xff]  ;;  %v32_v2 = vlaneseq  ;;  %vm39_vm0 = vcmask 130048   ;;  %vm64_vm2 = vcmask 7168  }
   0x6   :  { %99 = vset.pattern.permute.xlu0 %v157_v0  ;;  %v29_v4 = vld [vmem:[%s192_s1] sm:$0xff]  ;;  %s158_s0 = smov [#allocation5]   ;;  %s84_s22 = sshll.u32 %s194_s3, 4  ;;  %s85_s22 = int_to_ptr.hbm [resolvable:$true] %s84_s22 }
   0x7   :  { %35 = vperm.xlu0 %99, %v31_v1   ;;  %v33_v3 = vand.u32 127, %v32_v2  ;;  %v30_v5 = vld [vmem:[#allocation2] sm:$0xff]  ;;  %s82_s1 = sshll.u32 %s158_s0, 4  ;;  %s83_s1 = int_to_ptr.vmem [resolvable:$true] %s82_s1 }
  0x79   :  { %v36_v6 = vpop.permute.xlu0 %35 }
  0x7a   :  { %vm37_vm1 = vcmp.eq.s32.totalorder %v33_v3, %v36_v6 }
  0x7b   :  { %v43_v7 = vsel %vm37_vm1, %v30_v5, %v29_v4  ;;  %v38_v8 = vsel %vm37_vm1, %v30_v5, 0.0 }
  0x7c   :  { %v44_v9 = vsel %vm39_vm0, %v43_v7, -inf  ;;  %v40_v15 = vsel %vm39_vm0, %v38_v8, 0.0 }
  0x7d   :  { %45 = vmax.xlane.f32.xlu0 %v44_v9 }
  0xf0   :  { %v46_v10 = vpop.xlane.xlu0 %45 }
  0xf1   :  { %v47_v11 = vsub.f32 %v43_v7, %v46_v10 }
  0xf3   :  { %v48_v12 = vmul.f32 1.442695, %v47_v11 }
  0xf5   :  { %100 = vpow2.f32 %v48_v12 }
  0xfb   :  { %v101_v13 = vpop.eup %100 }
  0xfc   :  { %v50_v14 = vsel %vm39_vm0, %v101_v13, 0.0 }
  0xfd   :  { %51 = vadd.xlane.f32.xlu1 %v50_v14 }
 0x105   :  { %41 = vadd.xlane.f32.xlu1 %v40_v15 }
 0x170   :  { %v52_v16 = vpop.xlane.xlu1 %51 }
 0x171   :  { %102 = vlog2.f32 %v52_v16 }
 0x177   :  { %v103_v17 = vpop.eup %102 }
 0x178   :  { %v54_v18 = vmul.f32 0.6931472, %v103_v17  ;;  %v42_v20 = vpop.xlane.xlu1 %41 }
 0x17a   :  { %v55_v19 = vadd.f32 %v54_v18, %v46_v10 }
 0x17c   :  { %v56_v21 = vsub.f32 %v55_v19, %v42_v20 }
 0x17e   :  { %v65_v22 = vsel %vm64_vm2, %v56_v21, 0.0 }
 0x17f   :  { %66 = vadd.xlane.f32.xlu2 %v65_v22 }
 0x1f2   :  { %v67_v23 = vpop.xlane.xlu2 %66 }
 0x1f3   :  { %v68_v24 = vrot.slane %v67_v23, 4 }
 0x1f5   :  { %v69_v25 = vadd.f32 %v68_v24, %v67_v23 }
 0x1f7   :  { %v70_v26 = vrot.slane %v69_v25, 2 }
 0x1f9   :  { %v71_v27 = vadd.f32 %v70_v26, %v69_v25 }
 0x1fb   :  { %v72_v28 = vrot.slane %v71_v27, 1 }
 0x1fd   :  { %v73_v29 = vadd.f32 %v72_v28, %v71_v27 }
 0x1ff   :  { %94 = vpush %v73_v29 }
 0x230   :  { %s95_s23 = spop %94 }
 0x231   :  { %v75_v30 = vstv %s95_s23 }
 0x232   :  { %76 = vst [vmem:[#allocation5] sm:$0xff] %v75_v30 }
 0x233   :  { %87 = dma.vmem_to_hbm [thread:$0]  %s83_s1, 128, %s85_s22, [#allocation4]  }
 0x234   :  { %154 = dma.done.wait [#allocation4], 128  }
 0x235   :  { %155 = vsyncadd [#allocation4], 4294967168 }
 0x236   :  { %92 = vsyncpa [#allocation3], 1 }
 0x237   :  { %93 = vsyncpa [#allocation4], 1 }

</bundles_post_ra>
